<compile_context>
chip_gen: v6e
topology: v6e:2x2x1
jax: 0.10.0
libtpu: 0.0.40
codegen_flags: <defaults>
</compile_context>

<pallas_src>
import functools

import jax
import jax.numpy as jnp
from jax.experimental import pallas as pl
from jax.experimental.pallas import tpu as pltpu


def _cdiv(a, b):
    return (a + b - 1) // b


def _round_up(x, m):
    return ((x + m - 1) // m) * m


def _vmem_capacity_bytes():
    # Generation-aware VMEM capacity (128 MiB on v5e/v6e, 64 MiB on v7x).
    try:
        cap = int(getattr(pltpu.get_tpu_info(), "vmem_capacity_bytes", 0))
        if cap > 0:
            return cap
    except Exception:
        pass
    return 64 * 1024 * 1024  # conservative fallback (v7x-sized)


def _conv1x1_kernel(x_ref, w_ref, b_ref, o_ref):
    # x_ref: (bn, C_in, T)   activation tile, lane-dense on the spatial axis
    # w_ref: (C_out, C_in)   full weight, resident across the grid
    # b_ref: (C_out, 1)      bias column
    # o_ref: (bn, C_out, T)  output tile, lane-dense on the spatial axis
    w = w_ref[...]
    b = b_ref[...]
    for n in range(x_ref.shape[0]):  # static unroll over the folded batch
        acc = jnp.dot(w, x_ref[n], preferred_element_type=jnp.float32)
        o_ref[n] = (acc + b).astype(o_ref.dtype)


@functools.partial(jax.jit, static_argnames=("target_step_bytes",))
def output_layer_forward(x, weight, bias, target_step_bytes=4 * 1024 * 1024):
    """1x1 conv forward (PyTorch nn.Conv2d(in, out, 1) semantics).

    x:      (N, C_in, H, W)               NCHW, matching PyTorch
    weight: (C_out, C_in) or (C_out, C_in, 1, 1)
    bias:   (C_out,)
    returns (N, C_out, H, W)  with dtype == x.dtype
    """
    N, C_in, H, W = x.shape
    weight = weight.reshape(weight.shape[0], -1)          # (C_out, C_in)
    C_out = weight.shape[0]
    HW = H * W

    out_dtype = x.dtype
    itemsize = jnp.dtype(x.dtype).itemsize
    w_itemsize = jnp.dtype(weight.dtype).itemsize

    # Streamed bytes per spatial column (x in + y out), per image.
    col_bytes = (C_in + C_out) * itemsize

    # ---- spatial tile selection --------------------------------------------
    vmem_cap = _vmem_capacity_bytes()
    # Resident weight + bias footprint (fetched once, but still double-buffered
    # by the pipeline) — subtracted from the streaming budget.
    weight_bytes = 2 * (C_out * C_in + C_out) * w_itemsize
    # TODO(synk): if weight_bytes ever approaches the VMEM budget (very large
    # C_in*C_out), add a C_out grid axis instead of keeping the full weight
    # resident; unnecessary for typical UNet output-head sizes.
    stream_budget = max(vmem_cap // 3 - weight_bytes, 2 * 128 * col_bytes)

    cols_from_vmem = stream_budget // (2 * col_bytes)       # double-buffered
    cols_from_target = max(target_step_bytes // col_bytes, 128)
    cols_cap = max(128, min(cols_from_vmem, cols_from_target, 65536))

    HW_128 = _round_up(HW, 128)
    if HW < 128:
        tile_hw = HW                        # block == full dim (no masking)
    else:
        tile_hw = max(128, min(HW_128, (cols_cap // 128) * 128))

    num_hw_tiles = _cdiv(HW, tile_hw)

    # v7x has two TensorCores: keep at least two parallel grid steps when the
    # whole problem would otherwise be a single tile.
    if N == 1 and num_hw_tiles == 1 and HW_128 >= 256:
        tile_hw = _round_up(_cdiv(HW_128, 2), 128)
        num_hw_tiles = _cdiv(HW, tile_hw)

    # Fold several batch images into one grid step when a single tile covers
    # the whole image (amortizes the ~0.35us per-step grid overhead).
    bn = 1
    if num_hw_tiles == 1 and N > 1:
        bn = int(max(1, min(N, cols_cap // max(tile_hw, 1), 32)))
        if _cdiv(N, bn) < 2:                # keep >= 2 steps for two TCs
            bn = max(1, (N + 1) // 2)

    grid = (_cdiv(N, bn), num_hw_tiles)

    # Free reshape (contiguous): NCHW -> (N, C_in, H*W). No transpose, no pad.
    x_rows = x.reshape(N, C_in, HW)
    b_col = bias.reshape(C_out, 1)

    per_step_bytes = 2 * bn * tile_hw * col_bytes + weight_bytes
    vmem_limit = int(min(vmem_cap * 3 // 4,
                         max(8 * 1024 * 1024, per_step_bytes * 5 // 4)))

    cost = pl.CostEstimate(
        flops=2 * N * HW * C_in * C_out,
        transcendentals=0,
        bytes_accessed=itemsize * (N * C_in * HW + N * C_out * HW)
        + w_itemsize * (C_in * C_out + C_out),
    )

    y_rows = pl.pallas_call(
        _conv1x1_kernel,
        out_shape=jax.ShapeDtypeStruct((N, C_out, HW), out_dtype),
        grid_spec=pltpu.PrefetchScalarGridSpec(
            num_scalar_prefetch=0,
            grid=grid,
            in_specs=[
                pl.BlockSpec((bn, C_in, tile_hw), lambda i, j: (i, 0, j)),
                pl.BlockSpec((C_out, C_in), lambda i, j: (0, 0)),
                pl.BlockSpec((C_out, 1), lambda i, j: (0, 0)),
            ],
            out_specs=pl.BlockSpec((bn, C_out, tile_hw), lambda i, j: (i, 0, j)),
        ),
        compiler_params=pltpu.CompilerParams(
            dimension_semantics=("parallel", "parallel"),
            vmem_limit_bytes=vmem_limit,
        ),
        cost_estimate=cost,
    )(x_rows, weight, b_col)

    # Free reshape back to NCHW.
    return y_rows.reshape(N, C_out, H, W)


def _reference(x, weight, bias):
    # Pure-JAX reference: 1x1 conv == einsum over the channel axis.
    return jnp.einsum("nchw,oc->nohw", x, weight) + bias[None, :, None, None]


if __name__ == "__main__":
    key = jax.random.PRNGKey(0)
    k_x, k_w, k_b, k_x2, k_w2, k_b2 = jax.random.split(key, 6)

    # --- Test 1: nominal small UNet-head shape (HW a multiple of 128) -------
    N, C_in, C_out, H, W = 2, 4, 8, 16, 16
    x = jax.random.normal(k_x, (N, C_in, H, W), dtype=jnp.float32)
    # PyTorch Conv2d(in, out, 1) params: weight (out, in[,1,1]); bias (out,).
    bound = 1.0 / jnp.sqrt(C_in)
    weight = jax.random.uniform(k_w, (C_out, C_in), jnp.float32, -bound, bound)
    bias = jax.random.uniform(k_b, (C_out,), jnp.float32, -bound, bound)

    y = jax.block_until_ready(output_layer_forward(x, weight, bias))
    y_ref = _reference(x, weight, bias)
    assert y.shape == (N, C_out, H, W)
    assert jnp.allclose(y, y_ref, atol=1e-5, rtol=1e-5)

    # --- Test 2: non-128-multiple spatial size, N=1, 4D weight --------------
    # Exercises the pad-free masked edge block and the >=2-tile split.
    N2, C_in2, C_out2, H2, W2 = 1, 3, 2, 15, 15
    x2 = jax.random.normal(k_x2, (N2, C_in2, H2, W2), dtype=jnp.float32)
    w2 = jax.random.uniform(k_w2, (C_out2, C_in2, 1, 1), jnp.float32, -1.0, 1.0)
    b2 = jax.random.uniform(k_b2, (C_out2,), jnp.float32, -1.0, 1.0)

    y2 = jax.block_until_ready(output_layer_forward(x2, w2, b2))
    y2_ref = _reference(x2, w2.reshape(C_out2, C_in2), b2)
    assert y2.shape == (N2, C_out2, H2, W2)
    assert jnp.allclose(y2, y2_ref, atol=1e-5, rtol=1e-5)

    print("KERNEL_OK")
</pallas_src>

<mosaic_0001>
module attributes {stable_mosaic.version = 11 : i64} {
  func.func @_conv1x1_kernel(%arg0: i32, %arg1: i32, %arg2: memref<1x4x256xf32, #tpu.memory_space<vmem>>, %arg3: memref<8x4xf32, #tpu.memory_space<vmem>>, %arg4: memref<8x1xf32, #tpu.memory_space<vmem>>, %arg5: memref<1x8x256xf32, #tpu.memory_space<vmem>>) attributes {dimension_semantics = [#tpu.dimension_semantics<parallel>, #tpu.dimension_semantics<parallel>], iteration_bounds = array<i64: 2, 1>, scalar_prefetch = 0 : i64, scratch_operands = 0 : i64, tpu.core_type = #tpu.core_type<tc>, window_params = [{transform_indices = @transform_0, window_bounds = array<i64: 1, 4, 256>}, {pipeline_mode = #tpu.pipeline_mode<synchronous>, transform_indices = @transform_1, window_bounds = array<i64: 8, 4>}, {pipeline_mode = #tpu.pipeline_mode<synchronous>, transform_indices = @transform_2, window_bounds = array<i64: 8, 1>}, {transform_indices = @transform_3, window_bounds = array<i64: 1, 8, 256>}]} {
    %c0 = arith.constant 0 : index
    %c0_0 = arith.constant 0 : index
    %0 = vector.load %arg3[%c0, %c0_0] : memref<8x4xf32, #tpu.memory_space<vmem>>, vector<8x4xf32>
    %c0_1 = arith.constant 0 : index
    %c0_2 = arith.constant 0 : index
    %1 = vector.load %arg4[%c0_1, %c0_2] : memref<8x1xf32, #tpu.memory_space<vmem>>, vector<8x1xf32>
    %c0_3 = arith.constant 0 : index
    %c0_4 = arith.constant 0 : index
    %c0_5 = arith.constant 0 : index
    %2 = vector.load %arg2[%c0_3, %c0_4, %c0_5] : memref<1x4x256xf32, #tpu.memory_space<vmem>>, vector<1x4x256xf32>
    %3 = vector.shape_cast %2 : vector<1x4x256xf32> to vector<4x256xf32>
    %cst = arith.constant dense<0.000000e+00> : vector<8x256xf32>
    %4 = tpu.matmul %0, %3, %cst {dimension_numbers = #tpu.dot_dimension_numbers<[1], [0], [0], [1], [0, 0, 1, 1], [], []>} : vector<8x4xf32>, vector<4x256xf32>, vector<8x256xf32> -> vector<8x256xf32>
    %5 = vector.broadcast %1 : vector<8x1xf32> to vector<8x256xf32>
    %6 = arith.addf %4, %5 : vector<8x256xf32>
    %c0_6 = arith.constant 0 : index
    %c0_7 = arith.constant 0 : index
    %c0_8 = arith.constant 0 : index
    %7 = vector.load %arg5[%c0_6, %c0_7, %c0_8] : memref<1x8x256xf32, #tpu.memory_space<vmem>>, vector<1x8x256xf32>
    %8 = vector.shape_cast %7 : vector<1x8x256xf32> to vector<8x256xf32>
    %9 = vector.shape_cast %6 : vector<8x256xf32> to vector<1x8x256xf32>
    tpu.vector_store %arg5[%c0_6, %c0_7, %c0_8], %9 {strides = array<i32>} : memref<1x8x256xf32, #tpu.memory_space<vmem>>, vector<1x8x256xf32>,
    return
  }
  func.func @transform_0(%arg0: i32, %arg1: i32) -> (i32, i32, i32) {
    %c0_i32 = arith.constant 0 : i32
    %c0_i32_0 = arith.constant 0 : i32
    return %arg0, %c0_i32, %arg1 : i32, i32, i32
  }
  func.func @transform_1(%arg0: i32, %arg1: i32) -> (i32, i32) {
    %c0_i32 = arith.constant 0 : i32
    %c0_i32_0 = arith.constant 0 : i32
    %c0_i32_1 = arith.constant 0 : i32
    return %c0_i32, %c0_i32_0 : i32, i32
  }
  func.func @transform_2(%arg0: i32, %arg1: i32) -> (i32, i32) {
    %c0_i32 = arith.constant 0 : i32
    %c0_i32_0 = arith.constant 0 : i32
    %c0_i32_1 = arith.constant 0 : i32
    return %c0_i32, %c0_i32_0 : i32, i32
  }
  func.func @transform_3(%arg0: i32, %arg1: i32) -> (i32, i32, i32) {
    %c0_i32 = arith.constant 0 : i32
    %c0_i32_0 = arith.constant 0 : i32
    return %arg0, %c0_i32, %arg1 : i32, i32, i32
  }
}

</mosaic_0001>

<bundles_post_ra>
// kernel: output_layer_forward.1
= control target key start
LH: loop header
LB: loop body
LE: loop exit
PB: predicated region body
PF: predicated region fallthrough
CT: control target
= control target key end

     0   :  { %s479_s12 = smov 0   ;;  %s481_s13 = smov 0   ;;  %s518_s0 = inlined_call_operand.vmem [shape: f32[2,4,256], index: 0, kind: input, shape index: {}]   ;;  %s519_s1 = inlined_call_operand.vmem [shape: f32[8,4], index: 1, kind: input, shape index: {}]   ;;  %s520_s2 = inlined_call_operand.vmem [shape: f32[8,1], index: 2, kind: input, shape index: {}]   ;;  %s521_s3 = inlined_call_operand.vmem [shape: f32[2,8,256], index: 3, kind: output, shape index: {}]  }
   0x1   :  { %s483_s14 = smov 0  }
   0x2 LB: > { %s25_s15 = sadd.s32 1, %s451_s13  ;;  %p393_p0 = scmp.ge.s32.totalorder %s455_s14, 1  ;;  %s455_s14 = sphi %s483_s14, %s13_s14   ;;  %s451_s13 = sphi %s481_s13, %s523_s13   ;;  %s447_s12 = sphi %s479_s12, %s522_s12  }
   0x3   : > { %p27_p1 = scmp.ge.s32.totalorder %s25_s15, 2  ;;  %p158_p2 = scmp.lt.s32.totalorder %s455_s14, 3 }
   0x5   : > { %s525_s15 = smov (%p27_p1, %s25_s15), 0  ;;  %p159_p3 = pnand %p393_p0, %p158_p2 }
   0x6   : > { %p191_p4 = scmp.lt.s32.totalorder (!%p159_p3), %s447_s12, 1 }
   0x7   : > { %162 = sbr.rel (%p159_p3) target bundleno = 218 (0xda), region = 32 }
   0xc   : > { %v457_v0 = vmov 0.0   ;;  %v458_v1 = vmov 0   ;;  %v211_v2 = vld [vmem:[%s520_s2] sm:$0xff]  ;;  %s527_s12 = smov (!%p191_p4, %s447_s12), 1  ;;  %vm224_vm0 = vcmask 1043456   ;;  %vm220_vm1 = vcmask 31744  }
   0xd   : > { %293 = vmatprep.mubr.f32.mxu0 %v457_v0  ;;  %431 = vset.pattern.permute.xlu0 %v458_v1  ;;  %s403_s18 = sshll.u32 %s527_s12, 3  ;;  %v210_v5 = vld [vmem:[%s519_s1] sm:$0xff]  ;;  %s404_s24 = sshll.u32 %s527_s12, 4 }
   0xe   : > { %215 = vperm.xlu0 %431, %v211_v2   ;;  %s198_s21 = scalar_lea.vmem %s518_s0, %s403_s18  ;;  %s208_s27 = scalar_lea.vmem %s521_s3, %s404_s24 }
   0xf   : > { %v212_v3 = vld [vmem:[%s198_s21] sm:$0xff] }
  0x10   : > { %v219_v4 = vcombine.high %v212_v3, %v212_v3 }
  0x12   : > { %398 = vmatprep.subr.msk.mxu0 %vm224_vm0, %v219_v4 }
  0x13   : > { %399 = vmatpush1.msk.msra.mxu0 %vm224_vm0, %v212_v3 }
  0x14   : > { %400 = vmatmul.mubr.msk.f32.vlgmr.msra.gmra.mxu0 %vm220_vm1, %v210_v5 }
  0x89   : > { %v216_v6 = vpop.permute.xlu0 %215 }
  0xd4   : > { %v295_v7 = vpop.f32.mrf.mxu0 }
  0xd5   : > { %v296_v8 = vadd.f32 %v295_v7, %v216_v6 }
  0xd6   : > { %v297_v9 = vpop.f32.mrf.mxu0 }
  0xd7   : > { %300 = vst [vmem:[%s208_s27] sm:$0xff] %v296_v8  ;;  %v298_v10 = vadd.f32 %v297_v9, %v216_v6 }
  0xd9   : > { %301 = vst [vmem:[%s208_s27 + $0x8] sm:$0xff] %v298_v10 }
  0xda PF: > { %s13_s14 = sadd.s32 1, %s455_s14   ;;  %s522_s12 = smov %s451_s13 }
  0xdb   : > { %p10_p5 = scmp.ge.s32.totalorder %s13_s14, 4   ;;  %s523_s13 = smov %s525_s15 }
  0xdd   :  { %12 = sbr.rel (!%p10_p5) target bundleno = 2 (0x2), region = 62 }

</bundles_post_ra>
